<compile_context>
chip_gen: v5e
topology: v5e:2x2
jax: 0.10.0
libtpu: 0.0.40
codegen_flags: <defaults>
</compile_context>

<pallas_src>
import functools

import jax
import jax.numpy as jnp
import numpy as np
from jax.experimental import pallas as pl
from jax.experimental.pallas import tpu as pltpu


_UNROLL_THRESHOLD = 64  # fully unroll the step loop below this horizon


def _make_arima_kernel(p, d, steps):
    """Builds the Pallas kernel body for fixed static sizes.

    The kernel contains only the truly serial work:
      * `steps` AR recurrence steps on a register-held p-length shift register
      * d levels of inverse differencing (running sums), fused into the same
        launch so the forward is a single dispatched kernel.
    """

    if steps <= _UNROLL_THRESHOLD:
        # ---- fully unrolled, register-resident path (short horizons) ----
        def kernel(hist_ref, ar_w_ref, bias_ref, last_ref, out_ref):
            # hoist all parameter loads out of the recurrence
            w = [ar_w_ref[j] for j in range(p)]
            bias = bias_ref[0]  # ar bias + ma bias (MA input is provably zero)

            # AR recurrence on a register-held shift register
            state = [hist_ref[j] for j in range(p)]  # oldest .. newest
            preds = []
            for _ in range(steps):
                acc = bias
                for j in range(p):
                    acc = acc + w[j] * state[j]
                preds.append(acc)
                state = state[1:] + [acc]            # append pred, drop oldest

            # fused inverse differencing: integrate d times
            vals = preds
            for k in range(d - 1, -1, -1):
                run = last_ref[k]                    # last value of level k
                new_vals = []
                for t in range(steps):
                    run = run + vals[t]
                    new_vals.append(run)
                vals = new_vals

            for t in range(steps):
                out_ref[t] = vals[t]

        return kernel

    # ---- loop-based path (long horizons: bounded code size / compile time) ----
    def kernel(hist_ref, ar_w_ref, bias_ref, last_ref, out_ref):
        w = [ar_w_ref[j] for j in range(p)]
        bias = bias_ref[0]

        def ar_step(t, state):
            acc = bias
            for j in range(p):
                acc = acc + w[j] * state[j]
            out_ref[t] = acc                         # dynamic SMEM scalar store
            return tuple(state[1:]) + (acc,)

        init = tuple(hist_ref[j] for j in range(p))
        jax.lax.fori_loop(0, steps, ar_step, init)

        # inverse differencing in place on the SMEM output
        for k in range(d - 1, -1, -1):
            def integ_step(t, run):
                run = run + out_ref[t]
                out_ref[t] = run
                return run
            jax.lax.fori_loop(0, steps, integ_step, last_ref[k])

    return kernel


def arima_forward(x_enc, ar_w, ar_b, ma_w, ma_b, *, p, d, q, steps):
    """Mirrors ARIMA.forward(x, steps) for x of shape (1, S, 1)."""
    assert x_enc.ndim == 3 and x_enc.shape[0] == 1 and x_enc.shape[2] == 1, (
        "the reference module's view(1,-1) into Linear(p,1) requires B=C=1")
    S = x_enc.shape[1]
    # Must have at least p (AR) and q (MA) elements after d-order differencing
    # (the torch reference would otherwise feed a short view into nn.Linear).
    assert S - d >= max(p, 1) and S - d >= q, "not enough history after differencing"

    x = x_enc.reshape(S).astype(jnp.float32)

    # ---- vectorized d-order differencing (hoisted out of the kernel) ----
    # Also collect the last value of each level for the inverse differencing.
    level_last = []
    cur = x
    for _ in range(d):
        level_last.append(cur[-1])
        cur = cur[1:] - cur[:-1]
    hist = cur[-p:]  # last p differenced values, oldest .. newest
    last_vals = (jnp.stack(level_last).astype(jnp.float32)
                 if d > 0 else jnp.zeros((1,), jnp.float32))

    # MA path is degenerate in the reference: the error series is identically
    # zero (new_error = pred - ar_out - ma_out == 0), so the MA contribution
    # is just its bias.  Fold it into a single bias constant.
    bias = ar_b[0] + (ma_b[0] if q > 0 else jnp.float32(0.0))
    bias = jnp.reshape(bias, (1,)).astype(jnp.float32)

    kernel = _make_arima_kernel(p, d, steps)
    out = pl.pallas_call(
        kernel,
        out_shape=jax.ShapeDtypeStruct((steps,), jnp.float32),
        in_specs=[pl.BlockSpec(memory_space=pltpu.SMEM)] * 4,
        out_specs=pl.BlockSpec(memory_space=pltpu.SMEM),
    )(hist, ar_w.astype(jnp.float32), bias, last_vals)

    # torch reference returns [:, -steps:, :]  -> shape (1, steps, 1)
    return out.reshape(1, steps, 1)


def _numpy_reference(x_enc, ar_w, ar_b, ma_w, ma_b, p, d, q, steps):
    """Pure-numpy re-implementation of the original (un-simplified) semantics."""
    x = np.asarray(x_enc, dtype=np.float32).reshape(-1)
    diff = x.copy()
    for _ in range(d):
        diff = diff[1:] - diff[:-1]
    e = np.zeros_like(diff)
    preds = []
    for _ in range(steps):
        ar_out = float(np.dot(ar_w, diff[-p:]) + ar_b[0])
        ma_out = float(np.dot(ma_w, e[-q:]) + ma_b[0]) if q > 0 else 0.0
        pred = ar_out + ma_out
        preds.append(pred)
        diff = np.concatenate([diff, [pred]])
        e = np.concatenate([e, [pred - ar_out - ma_out]])
    vals = np.asarray(preds, dtype=np.float32)
    levels = [x]
    cur = x
    for _ in range(d):
        cur = cur[1:] - cur[:-1]
        levels.append(cur)
    for k in range(d, 0, -1):
        vals = levels[k - 1][-1] + np.cumsum(vals)
    return vals.reshape(1, steps, 1)


if __name__ == "__main__":
    # Small, deterministic configuration consistent with the module:
    #   p=3 (AR order), d=1 (differencing), q=2 (MA order),
    #   seq_len=8, pred_len(steps)=4, and B=C=1 (forced by the module).
    p, d, q = 3, 1, 2
    seq_len, pred_len = 8, 4

    key = jax.random.PRNGKey(0)
    k_x, k_arw, k_arb, k_maw, k_mab = jax.random.split(key, 5)

    x_enc = jax.random.normal(k_x, (1, seq_len, 1), dtype=jnp.float32)

    # Deterministic parameter init mimicking nn.Linear's uniform(-1/sqrt(in), +)
    ar_bound = 1.0 / np.sqrt(p)
    ma_bound = 1.0 / np.sqrt(q)
    ar_w = jax.random.uniform(k_arw, (p,), jnp.float32, -ar_bound, ar_bound)
    ar_b = jax.random.uniform(k_arb, (1,), jnp.float32, -ar_bound, ar_bound)
    ma_w = jax.random.uniform(k_maw, (q,), jnp.float32, -ma_bound, ma_bound)
    ma_b = jax.random.uniform(k_mab, (1,), jnp.float32, -ma_bound, ma_bound)

    fwd = jax.jit(functools.partial(arima_forward, p=p, d=d, q=q, steps=pred_len))
    out = fwd(x_enc, ar_w, ar_b, ma_w, ma_b)
    out = jax.block_until_ready(out)

    ref = _numpy_reference(np.asarray(x_enc), np.asarray(ar_w), np.asarray(ar_b),
                           np.asarray(ma_w), np.asarray(ma_b), p, d, q, pred_len)

    assert out.shape == (1, pred_len, 1), out.shape
    np.testing.assert_allclose(np.asarray(out), ref, rtol=1e-5, atol=1e-5)
    print("KERNEL_OK")
</pallas_src>

<mosaic_0001>
module attributes {stable_mosaic.version = 11 : i64} {
  func.func @kernel(%arg0: memref<3xf32, #tpu.memory_space<smem>>, %arg1: memref<3xf32, #tpu.memory_space<smem>>, %arg2: memref<1xf32, #tpu.memory_space<smem>>, %arg3: memref<1xf32, #tpu.memory_space<smem>>, %arg4: memref<4xf32, #tpu.memory_space<smem>>) attributes {dimension_semantics = [], scalar_prefetch = 0 : i64, scratch_operands = 0 : i64, tpu.core_type = #tpu.core_type<tc>} {
    %c0 = arith.constant 0 : index
    %0 = memref.load %arg1[%c0] : memref<3xf32, #tpu.memory_space<smem>>
    %c1 = arith.constant 1 : index
    %1 = memref.load %arg1[%c1] : memref<3xf32, #tpu.memory_space<smem>>
    %c2 = arith.constant 2 : index
    %2 = memref.load %arg1[%c2] : memref<3xf32, #tpu.memory_space<smem>>
    %c0_0 = arith.constant 0 : index
    %3 = memref.load %arg2[%c0_0] : memref<1xf32, #tpu.memory_space<smem>>
    %c0_1 = arith.constant 0 : index
    %4 = memref.load %arg0[%c0_1] : memref<3xf32, #tpu.memory_space<smem>>
    %c1_2 = arith.constant 1 : index
    %5 = memref.load %arg0[%c1_2] : memref<3xf32, #tpu.memory_space<smem>>
    %c2_3 = arith.constant 2 : index
    %6 = memref.load %arg0[%c2_3] : memref<3xf32, #tpu.memory_space<smem>>
    %7 = arith.mulf %0, %4 : f32
    %8 = arith.addf %3, %7 : f32
    %9 = arith.mulf %1, %5 : f32
    %10 = arith.addf %8, %9 : f32
    %11 = arith.mulf %2, %6 : f32
    %12 = arith.addf %10, %11 : f32
    %13 = arith.mulf %0, %5 : f32
    %14 = arith.addf %3, %13 : f32
    %15 = arith.mulf %1, %6 : f32
    %16 = arith.addf %14, %15 : f32
    %17 = arith.mulf %2, %12 : f32
    %18 = arith.addf %16, %17 : f32
    %19 = arith.mulf %0, %6 : f32
    %20 = arith.addf %3, %19 : f32
    %21 = arith.mulf %1, %12 : f32
    %22 = arith.addf %20, %21 : f32
    %23 = arith.mulf %2, %18 : f32
    %24 = arith.addf %22, %23 : f32
    %25 = arith.mulf %0, %12 : f32
    %26 = arith.addf %3, %25 : f32
    %27 = arith.mulf %1, %18 : f32
    %28 = arith.addf %26, %27 : f32
    %29 = arith.mulf %2, %24 : f32
    %30 = arith.addf %28, %29 : f32
    %c0_4 = arith.constant 0 : index
    %31 = memref.load %arg3[%c0_4] : memref<1xf32, #tpu.memory_space<smem>>
    %32 = arith.addf %31, %12 : f32
    %33 = arith.addf %32, %18 : f32
    %34 = arith.addf %33, %24 : f32
    %35 = arith.addf %34, %30 : f32
    %c0_5 = arith.constant 0 : index
    %36 = memref.load %arg4[%c0_5] : memref<4xf32, #tpu.memory_space<smem>>
    memref.store %32, %arg4[%c0_5] : memref<4xf32, #tpu.memory_space<smem>>
    %c1_6 = arith.constant 1 : index
    %37 = memref.load %arg4[%c1_6] : memref<4xf32, #tpu.memory_space<smem>>
    memref.store %33, %arg4[%c1_6] : memref<4xf32, #tpu.memory_space<smem>>
    %c2_7 = arith.constant 2 : index
    %38 = memref.load %arg4[%c2_7] : memref<4xf32, #tpu.memory_space<smem>>
    memref.store %34, %arg4[%c2_7] : memref<4xf32, #tpu.memory_space<smem>>
    %c3 = arith.constant 3 : index
    %39 = memref.load %arg4[%c3] : memref<4xf32, #tpu.memory_space<smem>>
    memref.store %35, %arg4[%c3] : memref<4xf32, #tpu.memory_space<smem>>
    return
  }
}

</mosaic_0001>

<bundles_post_ra>
// kernel: arima_forward.1
= control target key start
LH: loop header
LB: loop body
LE: loop exit
PB: predicated region body
PF: predicated region fallthrough
CT: control target
= control target key end

     0   :  { %11 = vsyncpa [#allocation6], 0  ;;  %s219_s0 = inlined_call_operand.vmem [shape: f32[3], index: 0, kind: input, shape index: {}]   ;;  %s220_s1 = inlined_call_operand.vmem [shape: f32[3], index: 1, kind: input, shape index: {}]   ;;  %s221_s2 = inlined_call_operand.<no memory space> [shape: f32[1], index: 2, kind: input, shape index: {}]   ;;  %s222_s3 = inlined_call_operand.<no memory space> [shape: f32[1], index: 3, kind: input, shape index: {}]   ;;  %s223_s4 = inlined_call_operand.hbm [shape: f32[4], index: 4, kind: output, shape index: {}]  }
   0x1   :  { %12 = vsyncpa [#allocation8], 0 }
   0x2   :  { %13 = vsyncpa [#allocation5], 0  ;;  %s19_s17 = sshll.u32 %s219_s0, 4  ;;  %s28_s20 = sshll.u32 %s220_s1, 4  ;;  %s20_s17 = int_to_ptr.vmem [resolvable:$true] %s19_s17  ;;  %s29_s20 = int_to_ptr.vmem [resolvable:$true] %s28_s20 }
   0x3   :  { %s155_s21 = smov [#allocation4]   ;;  %s156_s22 = smov [#allocation7]  }
   0x4   :  { %22 = dma.vmem_to_smem %s20_s17, 16, %s155_s21, [#allocation6]  }
   0x5   :  { %31 = dma.vmem_to_smem %s29_s20, 16, %s156_s22, [#allocation8]  }
   0x6   :  { %149 = dma.done.wait [#allocation6], 16  }
   0x7   :  { %150 = vsyncadd [#allocation6], 4294967280 }
   0x8   :  { %151 = dma.done.wait [#allocation8], 16  }
   0x9   :  { %152 = vsyncadd [#allocation8], 4294967280 }
   0xa   :  { %44 = sfence }
   0xb   :  { %s45_s23 = sld [smem:[#allocation7]] }
   0xc   :  { %s189_s24 = sld [smem:[#allocation7 + $0x1]] }
   0xd   :  { %s191_s0 = sld [smem:[#allocation7 + $0x2]] }
   0xe   :  { %s49_s1 = sld [smem:[#allocation4]] }
   0xf   :  { %s108_s25 = sld [smem:[#allocation4 + $0x1]] }
  0x10   :  { %s109_s26 = sld [smem:[#allocation4 + $0x2]] }
  0x14   :  { %s52_s27 = smul.f32 %s49_s1, %s45_s23 }
  0x15   :  { %s54_s28 = smul.f32 %s108_s25, %s189_s24 }
  0x16   :  { %s53_s5 = sadd.f32 %s52_s27, %s221_s2  ;;  %s56_s6 = smul.f32 %s109_s26, %s191_s0 }
  0x17   :  { %s58_s7 = smul.f32 %s108_s25, %s45_s23 }
  0x18   :  { %s55_s8 = sadd.f32 %s54_s28, %s53_s5  ;;  %s60_s9 = smul.f32 %s109_s26, %s189_s24 }
  0x19   :  { %s59_s12 = sadd.f32 %s58_s7, %s221_s2  ;;  %s64_s13 = smul.f32 %s109_s26, %s45_s23 }
  0x1a   :  { %s57_s14 = sadd.f32 %s56_s6, %s55_s8 }
  0x1b   :  { %s61_s15 = sadd.f32 %s60_s9, %s59_s12  ;;  %s94_s12 = sshll.u32 %s223_s4, 4  ;;  %s95_s12 = int_to_ptr.hbm [resolvable:$true] %s94_s12 }
  0x1c   :  { %s62_s16 = smul.f32 %s191_s0, %s57_s14  ;;  %s65_s19 = sadd.f32 %s64_s13, %s221_s2 }
  0x1d   :  { %s66_s20 = smul.f32 %s189_s24, %s57_s14  ;;  %s77_s1 = sadd.f32 %s57_s14, %s222_s3 }
  0x1e   :  { %s63_s25 = sadd.f32 %s62_s16, %s61_s15  ;;  %s70_s27 = smul.f32 %s57_s14, %s45_s23 }
  0x1f   :  { %s67_s28 = sadd.f32 %s66_s20, %s65_s19  ;;  %s157_s14 = smov [#allocation9]  }
  0x20   :  { %s68_s29 = smul.f32 %s191_s0, %s63_s25  ;;  %s71_s26 = sadd.f32 %s70_s27, %s221_s2 }
  0x21   :  { %s72_s6 = smul.f32 %s189_s24, %s63_s25  ;;  %s78_s7 = sadd.f32 %s77_s1, %s63_s25 }
  0x22   :  { %s69_s8 = sadd.f32 %s68_s29, %s67_s28 }
  0x23   :  { %s73_s9 = sadd.f32 %s72_s6, %s71_s26 }
  0x24   :  { %s74_s13 = smul.f32 %s191_s0, %s69_s8  ;;  %s79_s17 = sadd.f32 %s78_s7, %s69_s8 }
  0x25   :  { %82 = sst [smem:[#allocation9]] %s77_s1 }
  0x26   :  { %s75_s3 = sadd.f32 %s74_s13, %s73_s9 }
  0x27   :  { %84 = sst [smem:[#allocation9 + $0x1]] %s78_s7 }
  0x28   :  { %s80_s23 = sadd.f32 %s79_s17, %s75_s3 }
  0x29   :  { %86 = sst [smem:[#allocation9 + $0x2]] %s79_s17 }
  0x2a   :  { %88 = sst [smem:[#allocation9 + $0x3]] %s80_s23 }
  0x2b   :  { %97 = dma.smem_to_hbm %s157_s14, 16, %s95_s12, [#allocation5]  }
  0x2c   :  { %153 = dma.done.wait [#allocation5], 16  }
  0x2d   :  { %154 = vsyncadd [#allocation5], 4294967280 }
  0x2e   :  { %102 = sfence }
  0x2f   :  { %103 = vsyncpa [#allocation5], 1 }
  0x30   :  { %104 = vsyncpa [#allocation6], 1 }
  0x31   :  { %105 = vsyncpa [#allocation8], 1 }

</bundles_post_ra>
